<compile_context>
chip_gen: v7x
topology: tpu7x:2x2x1
jax: 0.10.0
libtpu: 0.0.40
codegen_flags: <defaults>
</compile_context>

<pallas_src>
import jax
import jax.numpy as jnp
from jax.experimental import pallas as pl
from jax.experimental.pallas import tpu as pltpu

NUM_SLOTS = 6  # top_left_x, top_left_y, bottom_right_x, bottom_right_y, w, h


def _round_up(x, m):
    return (x + m - 1) // m * m


def spatial_kernel(coords_ref, w_ref, o_ref):
    # coords_ref: (TM, 6) int32, already offset by slot*V (values in [0, 6V))
    # w_ref:      (KVp, TD) f32 — the 6 tables stacked on dim 0, zero-padded
    # o_ref:      (TM, TD) f32
    tm = coords_ref.shape[0]
    kvp = w_ref.shape[0]

    coords = coords_ref[...]                                       # (TM, 6)
    lane_iota = jax.lax.broadcasted_iota(jnp.int32, (tm, kvp), 1)  # (TM, KVp)

    # Combined one-hot over all 6 slots (disjoint V-wide segments -> OR of
    # compares against a single hoisted iota).
    hit = coords[:, 0:1] == lane_iota
    for k in range(1, NUM_SLOTS):
        hit = jnp.logical_or(hit, coords[:, k:k + 1] == lane_iota)
    onehot = hit.astype(jnp.float32)                               # (TM, KVp)

    # Single fused MXU matmul, written directly to the output block.
    o_ref[...] = jnp.dot(onehot, w_ref[...],
                         preferred_element_type=jnp.float32)


def spatial_module(coordinates, tables, *, tm=256, td=256):
    """coordinates: (B, S, 6) int; tables: (6, V, D) f32 -> (B, S, D) f32."""
    B, S, C = coordinates.shape
    assert C == NUM_SLOTS
    K, V, D = tables.shape
    assert K == NUM_SLOTS

    R = B * S
    KV = K * V

    # Tile sizes: multiples of 8 (sublane) / 128 (lane); shrink for tiny demos.
    TM = min(tm, _round_up(R, 8))
    TD = min(td, _round_up(D, 128))
    Rp = _round_up(R, TM)
    Dp = _round_up(D, TD)
    KVp = _round_up(KV, 128)

    # Stack the 6 tables into one (6V, D) matrix, zero-pad to (KVp, Dp).
    w2d = tables.reshape(KV, D)
    w2d = jnp.pad(w2d, ((0, KVp - KV), (0, Dp - D)))

    # Flatten coords to rows and add per-slot offsets k*V so one combined
    # one-hot over 6V lanes covers all six lookups. Padded rows get the
    # out-of-range value KVp so they match nothing (zero output rows).
    offs = jnp.arange(K, dtype=jnp.int32) * V
    cf = coordinates.reshape(R, K).astype(jnp.int32) + offs[None, :]
    cf = jnp.pad(cf, ((0, Rp - R), (0, 0)), constant_values=KVp)

    out = pl.pallas_call(
        spatial_kernel,
        out_shape=jax.ShapeDtypeStruct((Rp, Dp), jnp.float32),
        grid_spec=pltpu.PrefetchScalarGridSpec(
            num_scalar_prefetch=0,
            grid=(Rp // TM, Dp // TD),
            in_specs=[
                pl.BlockSpec((TM, K), lambda i, j: (i, 0)),    # coord row tile
                pl.BlockSpec((KVp, TD), lambda i, j: (0, j)),  # table D-tile
            ],
            out_specs=pl.BlockSpec((TM, TD), lambda i, j: (i, j)),
        ),
        compiler_params=pltpu.CompilerParams(
            # Both grid axes are independent -> shard across TensorCores.
            dimension_semantics=("parallel", "parallel"),
            # Headroom above the 16/32 MiB scoped defaults; D-tiling keeps the
            # resident table slab small enough for v5e/v6e/v7x.
            vmem_limit_bytes=64 * 1024 * 1024,
        ),
    )(cf, w2d)

    return out[:R, :D].reshape(B, S, D)


if __name__ == "__main__":
    # Small config: max_2d_position_embeddings=16, d_model=32, batch=2, seq=8
    B, S = 2, 8
    V, D = 16, 32

    key = jax.random.PRNGKey(0)
    k_tab, k_coord = jax.random.split(key)

    # Six embedding tables stacked (6, V, D), ~ nn.Embedding default init.
    tables = jax.random.normal(k_tab, (NUM_SLOTS, V, D), dtype=jnp.float32)
    # Integer box coordinates in [0, V)
    coordinates = jax.random.randint(k_coord, (B, S, NUM_SLOTS), 0, V,
                                     dtype=jnp.int32)

    out = spatial_module(coordinates, tables)
    out = jax.block_until_ready(out)

    # Pure-JAX reference (gather + sum) to validate semantics.
    ref = jnp.zeros((B, S, D), jnp.float32)
    for k in range(NUM_SLOTS):
        ref = ref + tables[k][coordinates[:, :, k]]
    assert out.shape == (B, S, D)
    assert jnp.allclose(out, ref, atol=1e-5, rtol=1e-5)

    # NOTE: out-of-range / negative indices contribute zeros instead of
    # erroring like nn.Embedding (semantic difference only, not hit here).
    print("KERNEL_OK")
</pallas_src>

<mosaic_0001>
module attributes {stable_mosaic.version = 11 : i64} {
  func.func @spatial_kernel(%arg0: i32, %arg1: i32, %arg2: memref<16x6xi32, #tpu.memory_space<vmem>>, %arg3: memref<128x128xf32, #tpu.memory_space<vmem>>, %arg4: memref<16x128xf32, #tpu.memory_space<vmem>>) attributes {dimension_semantics = [#tpu.dimension_semantics<parallel>, #tpu.dimension_semantics<parallel>], iteration_bounds = array<i64: 1, 1>, scalar_prefetch = 0 : i64, scratch_operands = 0 : i64, tpu.core_type = #tpu.core_type<tc>, window_params = [{transform_indices = @transform_0, window_bounds = array<i64: 16, 6>}, {transform_indices = @transform_1, window_bounds = array<i64: 128, 128>}, {transform_indices = @transform_2, window_bounds = array<i64: 16, 128>}]} {
    %c0 = arith.constant 0 : index
    %c0_0 = arith.constant 0 : index
    %0 = vector.load %arg2[%c0, %c0_0] : memref<16x6xi32, #tpu.memory_space<vmem>>, vector<16x6xi32>
    %1 = tpu.iota {dimensions = array<i32: 1>} : vector<16x128xi32>
    %2 = vector.extract_strided_slice %0 {offsets = [0, 0], sizes = [16, 1], strides = [1, 1]} : vector<16x6xi32> to vector<16x1xi32>
    %3 = vector.broadcast %2 : vector<16x1xi32> to vector<16x128xi32>
    %4 = arith.cmpi eq, %3, %1 : vector<16x128xi32>
    %5 = vector.extract_strided_slice %0 {offsets = [0, 1], sizes = [16, 1], strides = [1, 1]} : vector<16x6xi32> to vector<16x1xi32>
    %6 = vector.broadcast %5 : vector<16x1xi32> to vector<16x128xi32>
    %7 = arith.cmpi eq, %6, %1 : vector<16x128xi32>
    %8 = arith.ori %4, %7 : vector<16x128xi1>
    %9 = vector.extract_strided_slice %0 {offsets = [0, 2], sizes = [16, 1], strides = [1, 1]} : vector<16x6xi32> to vector<16x1xi32>
    %10 = vector.broadcast %9 : vector<16x1xi32> to vector<16x128xi32>
    %11 = arith.cmpi eq, %10, %1 : vector<16x128xi32>
    %12 = arith.ori %8, %11 : vector<16x128xi1>
    %13 = vector.extract_strided_slice %0 {offsets = [0, 3], sizes = [16, 1], strides = [1, 1]} : vector<16x6xi32> to vector<16x1xi32>
    %14 = vector.broadcast %13 : vector<16x1xi32> to vector<16x128xi32>
    %15 = arith.cmpi eq, %14, %1 : vector<16x128xi32>
    %16 = arith.ori %12, %15 : vector<16x128xi1>
    %17 = vector.extract_strided_slice %0 {offsets = [0, 4], sizes = [16, 1], strides = [1, 1]} : vector<16x6xi32> to vector<16x1xi32>
    %18 = vector.broadcast %17 : vector<16x1xi32> to vector<16x128xi32>
    %19 = arith.cmpi eq, %18, %1 : vector<16x128xi32>
    %20 = arith.ori %16, %19 : vector<16x128xi1>
    %21 = vector.extract_strided_slice %0 {offsets = [0, 5], sizes = [16, 1], strides = [1, 1]} : vector<16x6xi32> to vector<16x1xi32>
    %22 = vector.broadcast %21 : vector<16x1xi32> to vector<16x128xi32>
    %23 = arith.cmpi eq, %22, %1 : vector<16x128xi32>
    %24 = arith.ori %20, %23 : vector<16x128xi1>
    %25 = arith.extui %24 : vector<16x128xi1> to vector<16x128xi32>
    %26 = arith.sitofp %25 : vector<16x128xi32> to vector<16x128xf32>
    %c0_1 = arith.constant 0 : index
    %c0_2 = arith.constant 0 : index
    %27 = vector.load %arg3[%c0_1, %c0_2] : memref<128x128xf32, #tpu.memory_space<vmem>>, vector<128x128xf32>
    %cst = arith.constant dense<0.000000e+00> : vector<16x128xf32>
    %28 = tpu.matmul %26, %27, %cst {dimension_numbers = #tpu.dot_dimension_numbers<[1], [0], [0], [1], [0, 0, 1, 1], [], []>} : vector<16x128xf32>, vector<128x128xf32>, vector<16x128xf32> -> vector<16x128xf32>
    %c0_3 = arith.constant 0 : index
    %c0_4 = arith.constant 0 : index
    %29 = vector.load %arg4[%c0_3, %c0_4] : memref<16x128xf32, #tpu.memory_space<vmem>>, vector<16x128xf32>
    tpu.vector_store %arg4[%c0_3, %c0_4], %28 {strides = array<i32>} : memref<16x128xf32, #tpu.memory_space<vmem>>, vector<16x128xf32>,
    return
  }
  func.func @transform_0(%arg0: i32, %arg1: i32) -> (i32, i32) {
    %c0_i32 = arith.constant 0 : i32
    %c0_i32_0 = arith.constant 0 : i32
    return %arg0, %c0_i32 : i32, i32
  }
  func.func @transform_1(%arg0: i32, %arg1: i32) -> (i32, i32) {
    %c0_i32 = arith.constant 0 : i32
    %c0_i32_0 = arith.constant 0 : i32
    return %c0_i32, %arg1 : i32, i32
  }
  func.func @transform_2(%arg0: i32, %arg1: i32) -> (i32, i32) {
    %c0_i32 = arith.constant 0 : i32
    return %arg0, %arg1 : i32, i32
  }
}

</mosaic_0001>

<bundles_post_ra>
// kernel: tpu_custom_call.1
= control target key start
LH: loop header
LB: loop body
LE: loop exit
PB: predicated region body
PF: predicated region fallthrough
CT: control target
= control target key end

     0   :  { %7 = vsyncpa [#allocation3], 0  ;;  %s471_s0 = inlined_call_operand.hbm [shape: s32[16,6], index: 0, kind: input, shape index: {}]   ;;  %s472_s1 = inlined_call_operand.hbm [shape: f32[128,128], index: 1, kind: input, shape index: {}]   ;;  %s473_s2 = inlined_call_operand.hbm [shape: f32[16,128], index: 2, kind: output, shape index: {}]  }
   0x1   :  { %8 = vsyncpa [#allocation6], 0 }
   0x2   :  { %9 = vsyncpa [#allocation4], 0  ;;  %s399_s9 = smov [#allocation2]   ;;  %s327_s13 = scalar_lea.hbm %s471_s0, 256 }
   0x3   :  { %s15_s10 = sshll.u32 %s399_s9, 4  ;;  %p328_p0 = scmp.ne.s32.totalorder %s471_s0, %s327_s13  ;;  %s16_s10 = int_to_ptr.vmem [resolvable:$true] %s15_s10 }
   0x4   :  { %p331_p1 = scmp.lt.u32.totalorder %s327_s13, %s471_s0 }
   0x6   :  { %p333_p2 = pnand %p331_p1, %p328_p0 }
   0x8   :  { %336 = shalt.err (!%p333_p2)
}
   0x9   :  { %s337_s18 = scalar_lea.vmem %s16_s10, 256  ;;  %p342_p4 = scmp.lt.s32.totalorder %s16_s10, %s16_s10 }
   0xa   :  { %p338_p3 = scmp.ne.s32.totalorder %s16_s10, %s337_s18  ;;  %p343_p5 = scmp.lt.s32.totalorder %s337_s18, %s337_s18 }
   0xc   :  { %p344_p6 = por %p343_p5, %p342_p4 }
   0xe   :  { %p345_p7 = pnand %p344_p6, %p338_p3 }
  0x10   :  { %348 = shalt.err (!%p345_p7)
}
  0x11   :  { %s400_s19 = smov 128   ;;  %s401_s20 = smov 8  }
  0x12   :  { %21 = dma.hbm_to_vmem [thread:$0]  %s471_s0, 256, %s16_s10, [#allocation3], %s400_s19, %s400_s19, %s401_s20  }
  0x13   :  { %s402_s23 = smov [#allocation5]   ;;  %s349_s27 = scalar_lea.hbm %s472_s1, 2048 }
  0x14   :  { %s27_s24 = sshll.u32 %s402_s23, 4  ;;  %p350_p8 = scmp.ne.s32.totalorder %s472_s1, %s349_s27  ;;  %s28_s24 = int_to_ptr.vmem [resolvable:$true] %s27_s24 }
  0x15   :  { %p353_p9 = scmp.lt.u32.totalorder %s349_s27, %s472_s1 }
  0x17   :  { %p355_p10 = pnand %p353_p9, %p350_p8 }
  0x19   :  { %358 = shalt.err (!%p355_p10)
}
  0x1a   :  { %s359_s4 = scalar_lea.vmem %s28_s24, 2048  ;;  %p364_p12 = scmp.lt.s32.totalorder %s28_s24, %s28_s24 }
  0x1b   :  { %p360_p11 = scmp.ne.s32.totalorder %s28_s24, %s359_s4  ;;  %p365_p13 = scmp.lt.s32.totalorder %s359_s4, %s359_s4 }
  0x1d   :  { %p366_p0 = por %p365_p13, %p364_p12 }
  0x1f   :  { %p367_p1 = pnand %p366_p0, %p360_p11 }
  0x21   :  { %370 = shalt.err (!%p367_p1)
}
  0x22   :  { %33 = dma.hbm_to_vmem [thread:$0]  %s472_s1, 2048, %s28_s24, [#allocation6], %s400_s19, %s400_s19, %s401_s20  }
  0x23   :  { %393 = dma.done.wait [#allocation3], 256  }
  0x24   :  { %394 = vsyncadd [#allocation3], 4294967040 }
  0x25   :  { %395 = dma.done.wait [#allocation6], 2048  }
  0x26   :  { %396 = vsyncadd [#allocation6], 4294965248  ;;  %v403_v0 = vmov 0   ;;  %v41_v1 = vld [vmem:[#allocation2 + $0x8] sm:$0xff]  ;;  %v40_v2 = vld [vmem:[#allocation2] sm:$0xff]  ;;  %v404_v9 = vmov 1   ;;  %v42_v37 = vlaneseq }
  0x27   :  { %318 = vset.pattern.permute.xlu1 %v403_v0  ;;  %316 = vset.pattern.permute.xlu0 %v403_v0  ;;  %v106_v3 = vld [vmem:[#allocation5] sm:$0xff]  ;;  %v107_v4 = vld [vmem:[#allocation5 + $0x8] sm:$0xff]  ;;  %v108_v6 = vld [vmem:[#allocation5 + $0x10] sm:$0xff]  ;;  %v405_v13 = vmov 2   ;;  %v406_v17 = vmov 3   ;;  %v407_v18 = vmov 4  }
  0x28   :  { %48 = vperm.xlu1 %318, %v41_v1   ;;  %45 = vperm.xlu0 %316, %v40_v2   ;;  %v272_v5 = vpack.c.bf16 %v107_v4, %v106_v3  ;;  %v109_v7 = vld [vmem:[#allocation5 + $0x18] sm:$0xff]  ;;  %v110_v10 = vld [vmem:[#allocation5 + $0x20] sm:$0xff]  ;;  %v111_v11 = vld [vmem:[#allocation5 + $0x28] sm:$0xff]  ;;  %v408_v22 = vmov 5   ;;  %v43_v38 = vand.u32 127, %v42_v37  ;;  %v409_v46 = vmov 0.0  }
  0x29   :  { %v276_v8 = vpack.c.bf16 %v109_v7, %v108_v6  ;;  %v280_v12 = vpack.c.bf16 %v111_v11, %v110_v10  ;;  %v112_v14 = vld [vmem:[#allocation5 + $0x30] sm:$0xff]  ;;  %v113_v15 = vld [vmem:[#allocation5 + $0x38] sm:$0xff]  ;;  %v114_v19 = vld [vmem:[#allocation5 + $0x40] sm:$0xff]  ;;  %s410_s1 = smov [#allocation7]  }
  0x2a   :  { %273 = vmatprep.subr.bf16.mxu0 %v272_v5  ;;  %v284_v16 = vpack.c.bf16 %v113_v15, %v112_v14  ;;  %v115_v20 = vld [vmem:[#allocation5 + $0x48] sm:$0xff]  ;;  %v116_v23 = vld [vmem:[#allocation5 + $0x50] sm:$0xff]  ;;  %v117_v24 = vld [vmem:[#allocation5 + $0x58] sm:$0xff]  ;;  %s204_s6 = sshll.u32 %s410_s1, 4  ;;  %s205_s6 = int_to_ptr.vmem [resolvable:$true] %s204_s6 }
  0x2b   :  { %275 = vmatpush3.bf16.msra.mxu0 %v272_v5  ;;  %v288_v21 = vpack.c.bf16 %v115_v20, %v114_v19  ;;  %v292_v25 = vpack.c.bf16 %v117_v24, %v116_v23  ;;  %v118_v26 = vld [vmem:[#allocation5 + $0x60] sm:$0xff]  ;;  %v119_v27 = vld [vmem:[#allocation5 + $0x68] sm:$0xff]  ;;  %v120_v29 = vld [vmem:[#allocation5 + $0x70] sm:$0xff]  ;;  %s371_s7 = scalar_lea.vmem %s205_s6, 256  ;;  %p376_p3 = scmp.lt.s32.totalorder %s205_s6, %s205_s6 }
  0x2c   :  { %319 = vset.pattern.permute.xlu1 %v404_v9  ;;  %317 = vset.pattern.permute.xlu0 %v404_v9  ;;  %v296_v28 = vpack.c.bf16 %v119_v27, %v118_v26  ;;  %v121_v30 = vld [vmem:[#allocation5 + $0x78] sm:$0xff]  ;;  %p372_p2 = scmp.ne.s32.totalorder %s205_s6, %s371_s7  ;;  %p377_p4 = scmp.lt.s32.totalorder %s371_s7, %s371_s7 }
  0x2d   :  { %56 = vperm.xlu1 %319, %v41_v1   ;;  %53 = vperm.xlu0 %317, %v40_v2   ;;  %v300_v31 = vpack.c.bf16 %v121_v30, %v120_v29 }
  0x2e   :  { %277 = vmatprep.subr.bf16.mxu0 %v276_v8  ;;  %p378_p5 = por %p377_p4, %p376_p3 }
  0x2f   :  { %279 = vmatpush3.bf16.msra.mxu0 %v276_v8 }
  0x30   :  { %281 = vmatprep.subr.bf16.mxu0 %v280_v12  ;;  %p379_p6 = pnand %p378_p5, %p372_p2 }
  0x31   :  { %320 = vset.pattern.permute.xlu1 %v405_v13  ;;  %321 = vset.pattern.permute.xlu0 %v405_v13 }
  0x32   :  { %63 = vperm.xlu1 %320, %v40_v2   ;;  %66 = vperm.xlu0 %321, %v41_v1  }
  0x33   :  { %283 = vmatpush3.bf16.msra.mxu0 %v280_v12 }
  0x34   :  { %285 = vmatprep.subr.bf16.mxu0 %v284_v16 }
  0x36   :  { %322 = vset.pattern.permute.xlu1 %v406_v17  ;;  %323 = vset.pattern.permute.xlu0 %v407_v18 }
  0x37   :  { %73 = vperm.xlu1 %322, %v40_v2   ;;  %83 = vperm.xlu0 %323, %v40_v2  }
  0x38   :  { %287 = vmatpush3.bf16.msra.mxu0 %v284_v16 }
  0x39   :  { %289 = vmatprep.subr.bf16.mxu0 %v288_v21 }
  0x3b   :  { %76 = vperm.xlu1 %322, %v41_v1   ;;  %326 = vset.pattern.permute.xlu0 %v408_v22 }
  0x3c   :  { %96 = vperm.xlu0 %326, %v41_v1   ;;  %291 = vmatpush3.bf16.msra.mxu0 %v288_v21 }
  0x3d   :  { %293 = vmatprep.subr.bf16.mxu0 %v292_v25 }
  0x3f   :  { %324 = vset.pattern.permute.xlu1 %v407_v18 }
  0x40   :  { %86 = vperm.xlu1 %324, %v41_v1   ;;  %295 = vmatpush3.bf16.msra.mxu0 %v292_v25 }
  0x41   :  { %297 = vmatprep.subr.bf16.mxu0 %v296_v28 }
  0x44   :  { %325 = vset.pattern.permute.xlu1 %v408_v22  ;;  %299 = vmatpush3.bf16.msra.mxu0 %v296_v28 }
  0x45   :  { %93 = vperm.xlu1 %325, %v40_v2   ;;  %301 = vmatprep.subr.bf16.mxu0 %v300_v31 }
  0x48   :  { %303 = vmatpush3.bf16.msra.mxu0 %v300_v31 }
  0xa7   :  { %v49_v32 = vpop.permute.xlu1 %48  ;;  %v46_v33 = vpop.permute.xlu0 %45 }
  0xa8   :  { %vm50_vm0 = vcmp.eq.s32.totalorder %v46_v33, %v43_v38  ;;  %vm51_vm5 = vcmp.eq.s32.totalorder %v49_v32, %v43_v38 }
  0xac   :  { %v57_v34 = vpop.permute.xlu1 %56  ;;  %v54_v35 = vpop.permute.xlu0 %53 }
  0xad   :  { %vm58_vm1 = vcmp.eq.s32.totalorder %v54_v35, %v43_v38  ;;  %vm59_vm2 = vcmp.eq.s32.totalorder %v57_v34, %v43_v38 }
  0xae   :  { %vm60_vm3 = vmor %vm50_vm0, %vm58_vm1 }
  0xaf   :  { %vm61_vm7 = vmor %vm51_vm5, %vm59_vm2 }
  0xb1   :  { %v64_v36 = vpop.permute.xlu1 %63  ;;  %v67_v40 = vpop.permute.xlu0 %66 }
  0xb2   :  { %vm68_vm4 = vcmp.eq.s32.totalorder %v64_v36, %v43_v38  ;;  %vm69_vm6 = vcmp.eq.s32.totalorder %v67_v40, %v43_v38 }
  0xb3   :  { %vm70_vm9 = vmor %vm60_vm3, %vm68_vm4 }
  0xb4   :  { %vm71_vm11 = vmor %vm61_vm7, %vm69_vm6 }
  0xb6   :  { %v74_v39 = vpop.permute.xlu1 %73  ;;  %v84_v42 = vpop.permute.xlu0 %83 }
  0xb7   :  { %vm78_vm8 = vcmp.eq.s32.totalorder %v74_v39, %v43_v38  ;;  %vm88_vm14 = vcmp.eq.s32.totalorder %v84_v42, %v43_v38 }
  0xb8   :  { %vm80_vm12 = vmor %vm70_vm9, %vm78_vm8 }
  0xb9   :  { %vm90_vm2 = vmor %vm80_vm12, %vm88_vm14 }
  0xba   :  { %v77_v41 = vpop.permute.xlu1 %76 }
  0xbb   :  { %vm79_vm10 = vcmp.eq.s32.totalorder %v77_v41, %v43_v38  ;;  %v97_v44 = vpop.permute.xlu0 %96 }
  0xbc   :  { %vm81_vm15 = vmor %vm71_vm11, %vm79_vm10  ;;  %vm99_vm1 = vcmp.eq.s32.totalorder %v97_v44, %v43_v38 }
  0xbf   :  { %v87_v43 = vpop.permute.xlu1 %86 }
  0xc0   :  { %vm89_vm13 = vcmp.eq.s32.totalorder %v87_v43, %v43_v38 }
  0xc1   :  { %vm91_vm0 = vmor %vm81_vm15, %vm89_vm13 }
  0xc2   :  { %vm101_vm5 = vmor %vm91_vm0, %vm99_vm1 }
  0xc3   :  { %v218_v48 = vsel %vm101_vm5, 1.0, %v409_v46 }
  0xc4   :  { %v94_v45 = vpop.permute.xlu1 %93 }
  0xc5   :  { %vm98_vm3 = vcmp.eq.s32.totalorder %v94_v45, %v43_v38 }
  0xc6   :  { %vm100_vm4 = vmor %vm90_vm2, %vm98_vm3 }
  0xc7   :  { %v217_v47 = vsel %vm100_vm4, 1.0, %v409_v46 }
  0xc8   :  { %269 = vmatprep.mubr.f32.mxu0 %v217_v47 }
  0xc9   :  { %270 = vmatmul.mubr.f32.vlgmr.msra.gmra.mrb[0].mxu0 %v218_v48 }
 0x19c   :  { %v271_v49 = vpop.f32.mrb[0].mxu0 }
 0x19d   :  { %198 = vst [vmem:[#allocation7 + $0x8] sm:$0xff] %v271_v49  ;;  %v188_v50 = vpop.f32.mrb[1].mxu0 }
 0x19e   :  { %197 = vst [vmem:[#allocation7] sm:$0xff] %v188_v50 }
 0x19f   :  { %382 = shalt.err (!%p379_p6)
}
 0x1a0   :  { %s383_s10 = scalar_lea.hbm %s473_s2, 256 }
 0x1a1   :  { %p384_p7 = scmp.ne.s32.totalorder %s473_s2, %s383_s10  ;;  %p387_p8 = scmp.lt.u32.totalorder %s383_s10, %s473_s2 }
 0x1a3   :  { %p389_p9 = pnand %p387_p8, %p384_p7 }
 0x1a5   :  { %392 = shalt.err (!%p389_p9)
}
 0x1a6   :  { %210 = dma.vmem_to_hbm [thread:$0]  %s205_s6, 256, %s473_s2, [#allocation4], %s400_s19, %s400_s19, %s401_s20  }
 0x1a7   :  { %397 = dma.done.wait [#allocation4], 256  }
 0x1a8   :  { %398 = vsyncadd [#allocation4], 4294967040 }
 0x1a9   :  { %214 = vsyncpa [#allocation3], 1 }
 0x1aa   :  { %215 = vsyncpa [#allocation6], 1 }
 0x1ab   :  { %216 = vsyncpa [#allocation4], 1 }

</bundles_post_ra>
